<compile_context>
chip_gen: v7x
topology: tpu7x:2x2x1
jax: 0.10.0
libtpu: 0.0.40
codegen_flags: <defaults>
</compile_context>

<pallas_src>
import jax
import jax.numpy as jnp
from jax.experimental import pallas as pl
from jax.experimental.pallas import tpu as pltpu


LANES = 128  # lane-dense blocks: last block dim = 128


def _base_reward_kernel(scale_ref, loss_ref, out_ref):
    # Hot path: one fused VPU multiply per tile; scale is a single SMEM read.
    # Compute in f32 and cast once (bf16 accuracy / integer promotion).
    neg_scale = -scale_ref[0]  # f32 scalar
    out_ref[...] = (neg_scale * loss_ref[...].astype(jnp.float32)).astype(out_ref.dtype)


def _tile_config():
    """Per-TPU-generation (tile_target_bytes, vmem_limit_bytes or None)."""
    kind = ""
    try:
        kind = jax.devices()[0].device_kind.lower()
    except Exception:
        pass
    if "v7" in kind or "tpu7" in kind:
        # 64 MiB VMEM, 32 MiB default scoped limit -> raise it for big tiles.
        return 8 * 1024 * 1024, 48 * 1024 * 1024
    if "v6" in kind:
        # 128 MiB VMEM, 32 MiB default scope: 4 MiB tiles (16 MiB live bufs).
        return 4 * 1024 * 1024, 32 * 1024 * 1024
    # v5e (16 MiB default scope) and unknown chips: stay conservative.
    return 2 * 1024 * 1024, None


def base_reward_forward(loss, yest, ytrue, scale=1.0):
    """Pallas implementation of BaseReward.forward base semantics.

    yest / ytrue are part of the forward signature but unused by the base
    class, so they are intentionally never handed to the kernel (no DMA).
    """
    del yest, ytrue  # unused -> do not generate HBM->VMEM copies for them

    orig_shape = loss.shape
    in_dtype = loss.dtype
    # PyTorch `-scale * loss` promotes integer tensors to float.
    out_dtype = in_dtype if jnp.issubdtype(in_dtype, jnp.floating) else jnp.float32
    n = loss.size
    if n == 0:
        return jnp.zeros(orig_shape, out_dtype)

    itemsize = jnp.dtype(in_dtype).itemsize
    tile_bytes, vmem_limit = _tile_config()

    scale_arr = jnp.asarray(scale, jnp.float32).reshape((1,))
    cost = pl.CostEstimate(
        flops=n,
        transcendentals=0,
        bytes_accessed=n * itemsize + n * jnp.dtype(out_dtype).itemsize,
    )
    cparams = pltpu.CompilerParams(
        dimension_semantics=("parallel",),
        vmem_limit_bytes=vmem_limit,
    )

    flat = jnp.ravel(loss)  # contiguous -> free (no data movement)

    if n % LANES == 0:
        # ---- lane-aligned fast path: (rows, 128) slab, zero wrapper copies --
        rows = n // LANES
        x2d = flat.reshape(rows, LANES)  # contiguity-preserving reshape
        bytes_per_row = LANES * itemsize
        target_rows = max(8, (tile_bytes // bytes_per_row) // 8 * 8)
        if rows <= 8:
            tile_m = rows  # single full-extent block (legal for any rows)
        elif rows <= target_rows:
            # split into >=2 blocks so both v7x TCs run and DMA overlaps
            tile_m = min(target_rows, max(8, pl.cdiv(pl.cdiv(rows, 2), 8) * 8))
        else:
            tile_m = target_rows
        grid = (pl.cdiv(rows, tile_m),)  # ragged last block masked by Pallas

        out2d = pl.pallas_call(
            _base_reward_kernel,
            out_shape=jax.ShapeDtypeStruct((rows, LANES), out_dtype),
            grid=grid,
            in_specs=[
                pl.BlockSpec(memory_space=pltpu.MemorySpace.SMEM),   # scale (1,)
                pl.BlockSpec((tile_m, LANES), lambda i: (i, 0)),     # loss tile
            ],
            out_specs=pl.BlockSpec((tile_m, LANES), lambda i: (i, 0)),
            compiler_params=cparams,
            cost_estimate=cost,
        )(scale_arr, x2d)
        return out2d.reshape(orig_shape)

    # ---- ragged path (n % 128 != 0): 1-D flat blocks, no pad / no slice ----
    sub_elems = 8 * LANES  # 1024-element granules
    tile_elems = max(sub_elems, (tile_bytes // itemsize) // sub_elems * sub_elems)
    if n <= tile_elems:
        tile_elems = n  # single full-extent block (legal for any n)
    grid = (pl.cdiv(n, tile_elems),)  # partial final block masked by Pallas

    out_flat = pl.pallas_call(
        _base_reward_kernel,
        out_shape=jax.ShapeDtypeStruct((n,), out_dtype),
        grid=grid,
        in_specs=[
            pl.BlockSpec(memory_space=pltpu.MemorySpace.SMEM),  # scale (1,)
            pl.BlockSpec((tile_elems,), lambda i: (i,)),        # flat loss tile
        ],
        out_specs=pl.BlockSpec((tile_elems,), lambda i: (i,)),
        compiler_params=cparams,
        cost_estimate=cost,
    )(scale_arr, flat)
    return out_flat.reshape(orig_shape)


if __name__ == "__main__":
    key = jax.random.PRNGKey(0)
    k1, k2, k3, k4 = jax.random.split(key, 4)

    # --- small demo consistent with a per-sample loss batch ------------------
    batch, feat = 8, 128
    loss = jax.random.uniform(k1, (batch, feat), dtype=jnp.float32)
    yest = jax.random.normal(k2, (batch, feat), dtype=jnp.float32)
    ytrue = jax.random.normal(k3, (batch, feat), dtype=jnp.float32)
    scale = 1.5  # "parameter" from __init__(scale=...)

    out = jax.block_until_ready(base_reward_forward(loss, yest, ytrue, scale=scale))
    assert out.shape == loss.shape and out.dtype == loss.dtype
    assert jnp.allclose(out, -scale * loss, atol=1e-6, rtol=1e-6)

    # --- non-128-aligned shape: exercises the 1-D ragged (masked) path -------
    loss2 = jax.random.uniform(k2, (5, 37), dtype=jnp.float32)
    out2 = jax.block_until_ready(base_reward_forward(loss2, None, None, scale=0.25))
    assert out2.shape == loss2.shape
    assert jnp.allclose(out2, -0.25 * loss2, atol=1e-6, rtol=1e-6)

    # --- lane-aligned, multi-block path with a ragged last row-block ---------
    loss3 = jax.random.uniform(k4, (24, 384), dtype=jnp.float32)  # rows=72
    out3 = jax.block_until_ready(base_reward_forward(loss3, None, None, scale=2.0))
    assert out3.shape == loss3.shape
    assert jnp.allclose(out3, -2.0 * loss3, atol=1e-6, rtol=1e-6)

    print("KERNEL_OK")
</pallas_src>

<mosaic_0001>
module attributes {stable_mosaic.version = 11 : i64} {
  func.func @_base_reward_kernel(%arg0: i32, %arg1: memref<1xf32, #tpu.memory_space<smem>>, %arg2: memref<8x128xf32, #tpu.memory_space<vmem>>, %arg3: memref<8x128xf32, #tpu.memory_space<vmem>>) attributes {dimension_semantics = [#tpu.dimension_semantics<parallel>], iteration_bounds = array<i64: 1>, scalar_prefetch = 0 : i64, scratch_operands = 0 : i64, tpu.core_type = #tpu.core_type<tc>, window_params = [{transform_indices = @transform_0, window_bounds = array<i64: 1>}, {transform_indices = @transform_1, window_bounds = array<i64: 8, 128>}, {transform_indices = @transform_2, window_bounds = array<i64: 8, 128>}]} {
    %c0 = arith.constant 0 : index
    %0 = memref.load %arg1[%c0] : memref<1xf32, #tpu.memory_space<smem>>
    %cst = arith.constant 0.000000e+00 : f32
    %1 = arith.subf %cst, %0 : f32
    %c0_0 = arith.constant 0 : index
    %c0_1 = arith.constant 0 : index
    %2 = vector.load %arg2[%c0_0, %c0_1] : memref<8x128xf32, #tpu.memory_space<vmem>>, vector<8x128xf32>
    %3 = vector.broadcast %1 : f32 to vector<8x128xf32>
    %4 = arith.mulf %3, %2 : vector<8x128xf32>
    %c0_2 = arith.constant 0 : index
    %c0_3 = arith.constant 0 : index
    %5 = vector.load %arg3[%c0_2, %c0_3] : memref<8x128xf32, #tpu.memory_space<vmem>>, vector<8x128xf32>
    tpu.vector_store %arg3[%c0_2, %c0_3], %4 {strides = array<i32>} : memref<8x128xf32, #tpu.memory_space<vmem>>, vector<8x128xf32>,
    return
  }
  func.func @transform_0(%arg0: i32) -> i32 {
    %c0_i32 = arith.constant 0 : i32
    %c0_i32_0 = arith.constant 0 : i32
    return %c0_i32 : i32
  }
  func.func @transform_1(%arg0: i32) -> (i32, i32) {
    %c0_i32 = arith.constant 0 : i32
    %c0_i32_0 = arith.constant 0 : i32
    return %arg0, %c0_i32 : i32, i32
  }
  func.func @transform_2(%arg0: i32) -> (i32, i32) {
    %c0_i32 = arith.constant 0 : i32
    %c0_i32_0 = arith.constant 0 : i32
    return %arg0, %c0_i32 : i32, i32
  }
}

</mosaic_0001>

<bundles_post_ra>
// kernel: tpu_custom_call.1
= control target key start
LH: loop header
LB: loop body
LE: loop exit
PB: predicated region body
PF: predicated region fallthrough
CT: control target
= control target key end

     0   :  { %8 = vsyncpa [#allocation4], 0  ;;  %s140_s0 = inlined_call_operand.<no memory space> [shape: f32[1], index: 0, kind: input, shape index: {}]   ;;  %s141_s1 = inlined_call_operand.hbm [shape: f32[8,128], index: 1, kind: input, shape index: {}]   ;;  %s142_s2 = inlined_call_operand.hbm [shape: f32[8,128], index: 2, kind: output, shape index: {}]  }
   0x1   :  { %9 = vsyncpa [#allocation5], 0  ;;  %s96_s9 = smov [#allocation3]   ;;  %s48_s13 = scalar_lea.hbm %s141_s1, 128 }
   0x2   :  { %s18_s10 = sshll.u32 %s96_s9, 4  ;;  %p49_p0 = scmp.ne.s32.totalorder %s141_s1, %s48_s13  ;;  %s19_s10 = int_to_ptr.vmem [resolvable:$true] %s18_s10 }
   0x3   :  { %p52_p1 = scmp.lt.u32.totalorder %s48_s13, %s141_s1 }
   0x5   :  { %p54_p2 = pnand %p52_p1, %p49_p0 }
   0x7   :  { %57 = shalt.err (!%p54_p2)
}
   0x8   :  { %s58_s18 = scalar_lea.vmem %s19_s10, 128  ;;  %p63_p4 = scmp.lt.s32.totalorder %s19_s10, %s19_s10 }
   0x9   :  { %p59_p3 = scmp.ne.s32.totalorder %s19_s10, %s58_s18  ;;  %p64_p5 = scmp.lt.s32.totalorder %s58_s18, %s58_s18 }
   0xb   :  { %p65_p6 = por %p64_p5, %p63_p4 }
   0xd   :  { %p66_p7 = pnand %p65_p6, %p59_p3 }
   0xf   :  { %69 = shalt.err (!%p66_p7)
}
  0x10   :  { %21 = dma.hbm_to_vmem [thread:$0]  %s141_s1, 128, %s19_s10, [#allocation4]  }
  0x11   :  { %92 = dma.done.wait [#allocation4], 128  }
  0x12   :  { %93 = vsyncadd [#allocation4], 4294967168  ;;  %s26_s23 = ssub.f32 0.0, %s140_s0  ;;  %s97_s24 = smov [#allocation6]   ;;  %v27_v1 = vld [vmem:[#allocation3] sm:$0xff] }
  0x13   :  { %s37_s25 = sshll.u32 %s97_s24, 4  ;;  %s38_s25 = int_to_ptr.vmem [resolvable:$true] %s37_s25 }
  0x14   :  { %v28_v0 = vstv %s26_s23  ;;  %s70_s26 = scalar_lea.vmem %s38_s25, 128  ;;  %p75_p9 = scmp.lt.s32.totalorder %s38_s25, %s38_s25 }
  0x15   :  { %v29_v2 = vmul.f32 %v28_v0, %v27_v1  ;;  %p71_p8 = scmp.ne.s32.totalorder %s38_s25, %s70_s26  ;;  %p76_p10 = scmp.lt.s32.totalorder %s70_s26, %s70_s26 }
  0x17   :  { %30 = vst [vmem:[#allocation6] sm:$0xff] %v29_v2  ;;  %p77_p11 = por %p76_p10, %p75_p9 }
  0x19   :  { %p78_p12 = pnand %p77_p11, %p71_p8 }
  0x1b   :  { %81 = shalt.err (!%p78_p12)
}
  0x1c   :  { %s82_s28 = scalar_lea.hbm %s142_s2, 128 }
  0x1d   :  { %p83_p13 = scmp.ne.s32.totalorder %s142_s2, %s82_s28  ;;  %p86_p0 = scmp.lt.u32.totalorder %s82_s28, %s142_s2 }
  0x1f   :  { %p88_p1 = pnand %p86_p0, %p83_p13 }
  0x21   :  { %91 = shalt.err (!%p88_p1)
}
  0x22   :  { %40 = dma.vmem_to_hbm [thread:$0]  %s38_s25, 128, %s142_s2, [#allocation5]  }
  0x23   :  { %94 = dma.done.wait [#allocation5], 128  }
  0x24   :  { %95 = vsyncadd [#allocation5], 4294967168 }
  0x25   :  { %44 = vsyncpa [#allocation4], 1 }
  0x26   :  { %45 = vsyncpa [#allocation5], 1 }

</bundles_post_ra>
